<compile_context>
chip_gen: v7x
topology: tpu7x:2x2x1
jax: 0.10.0
libtpu: 0.0.40
codegen_flags: <defaults>
</compile_context>

<pallas_src>
import functools

import jax
import jax.numpy as jnp
from jax import lax
from jax.experimental import pallas as pl
from jax.experimental.pallas import tpu as pltpu

_LANE = 128
_SUBLANE = 8
_NEG_FILL = -1e30  # masks padded class lanes out of the softmax


def _round_up(x, m):
    return (x + m - 1) // m * m


def _gelu_exact(x):
    # PyTorch default GELU: 0.5 * x * (1 + erf(x / sqrt(2)))
    return 0.5 * x * (1.0 + lax.erf(x * 0.7071067811865476))


def _softmax_last(x):
    m = jnp.max(x, axis=-1, keepdims=True)
    e = jnp.exp(x - m)
    return e * pl.reciprocal(jnp.sum(e, axis=-1, keepdims=True), approx=True)


def mlp_cls_kernel(n_layers,
                   x_ref,
                   w_in_ref, b_in_ref,
                   w1_ref, b1_ref,
                   w2_ref, b2_ref,
                   w_cls_ref, b_cls_ref,
                   out_ref,
                   h_acc):
    l = pl.program_id(1)

    # input_proj: only at the first layer-step of each batch tile.
    @pl.when(l == 0)
    def _():
        h0 = jnp.dot(x_ref[...], w_in_ref[...],
                     preferred_element_type=jnp.float32)
        h_acc[...] = h0 + b_in_ref[...]

    if n_layers > 0:
        # One MLPBlock with streamed per-layer weights:
        #   h = gelu(c_proj(gelu(c_fc(h))))
        h = h_acc[...]
        h1 = _gelu_exact(
            jnp.dot(h.astype(jnp.bfloat16), w1_ref[0],
                    preferred_element_type=jnp.float32) + b1_ref[0])
        h2 = _gelu_exact(
            jnp.dot(h1.astype(jnp.bfloat16), w2_ref[0],
                    preferred_element_type=jnp.float32) + b2_ref[0])
        h_acc[...] = h2

    # cls_head + softmax: only at the last layer-step. Padded class lanes were
    # biased to -1e30 in the wrapper, so they vanish from the normalization.
    @pl.when(l == pl.num_programs(1) - 1)
    def _():
        logits = jnp.dot(h_acc[...].astype(jnp.bfloat16), w_cls_ref[...],
                         preferred_element_type=jnp.float32) + b_cls_ref[...]
        out_ref[...] = _softmax_last(logits).astype(out_ref.dtype)


def mlp_cls_forward(x, params, n_layers):
    B, D_in = x.shape
    H = params["w_in"].shape[1]
    C = params["w_cls"].shape[1]

    Dp = _round_up(D_in, _LANE)
    Hp = _round_up(H, _LANE)
    Cp = _round_up(C, _LANE)

    # Batch tile: 128 rows when the batch is large enough (MXU-friendly),
    # otherwise the whole (sublane-rounded) batch in one tile.
    TB = 128 if B >= 128 else _round_up(max(B, 1), _SUBLANE)
    Bp = _round_up(B, TB)
    grid_b = Bp // TB
    L = max(n_layers, 1)

    f32, bf16 = jnp.float32, jnp.bfloat16

    # Pad to lane/sublane-friendly shapes; weights in bf16 for the MXU,
    # biases in f32 (added after the f32-accumulated dot).
    xp = jnp.zeros((Bp, Dp), bf16).at[:B, :D_in].set(x.astype(bf16))
    w_in = jnp.zeros((Dp, Hp), bf16).at[:D_in, :H].set(params["w_in"].astype(bf16))
    b_in = jnp.zeros((1, Hp), f32).at[0, :H].set(params["b_in"].astype(f32))

    w1 = jnp.zeros((L, Hp, Hp), bf16)
    b1 = jnp.zeros((L, 1, Hp), f32)
    w2 = jnp.zeros((L, Hp, Hp), bf16)
    b2 = jnp.zeros((L, 1, Hp), f32)
    if n_layers > 0:
        w1 = w1.at[:, :H, :H].set(params["w1"].astype(bf16))
        b1 = b1.at[:, 0, :H].set(params["b1"].astype(f32))
        w2 = w2.at[:, :H, :H].set(params["w2"].astype(bf16))
        b2 = b2.at[:, 0, :H].set(params["b2"].astype(f32))

    w_cls = jnp.zeros((Hp, Cp), bf16).at[:H, :C].set(params["w_cls"].astype(bf16))
    b_cls = jnp.full((1, Cp), _NEG_FILL, f32).at[0, :C].set(params["b_cls"].astype(f32))

    # VMEM budget: resident weights + double-buffered streamed layer weights +
    # double-buffered x/out tiles + the f32 hidden accumulator, with headroom.
    resident = (Dp * Hp + Hp * Cp) * 2 + (Hp + Cp) * 4
    streamed = 2 * 2 * (Hp * Hp * 2 + Hp * 4)
    tiles = 2 * TB * Dp * 2 + 2 * TB * Cp * 4 + TB * Hp * 4
    vmem_limit = int(min(max(2 * (resident + streamed + tiles) + (4 << 20),
                             16 << 20),
                         64 << 20))

    grid_spec = pltpu.PrefetchScalarGridSpec(
        num_scalar_prefetch=0,
        grid=(grid_b, L),
        in_specs=[
            pl.BlockSpec((TB, Dp), lambda i, l: (i, 0)),        # x tile (resident across l)
            pl.BlockSpec((Dp, Hp), lambda i, l: (0, 0)),        # w_in   (resident)
            pl.BlockSpec((1, Hp), lambda i, l: (0, 0)),         # b_in   (resident)
            pl.BlockSpec((1, Hp, Hp), lambda i, l: (l, 0, 0)),  # w1[l]  (streamed)
            pl.BlockSpec((1, 1, Hp), lambda i, l: (l, 0, 0)),   # b1[l]  (streamed)
            pl.BlockSpec((1, Hp, Hp), lambda i, l: (l, 0, 0)),  # w2[l]  (streamed)
            pl.BlockSpec((1, 1, Hp), lambda i, l: (l, 0, 0)),   # b2[l]  (streamed)
            pl.BlockSpec((Hp, Cp), lambda i, l: (0, 0)),        # w_cls  (resident)
            pl.BlockSpec((1, Cp), lambda i, l: (0, 0)),         # b_cls  (resident)
        ],
        out_specs=pl.BlockSpec((TB, Cp), lambda i, l: (i, 0)),  # lane-dense output
        scratch_shapes=[pltpu.VMEM((TB, Hp), jnp.float32)],      # hidden carry
    )

    out_padded = pl.pallas_call(
        functools.partial(mlp_cls_kernel, n_layers),
        out_shape=jax.ShapeDtypeStruct((Bp, Cp), jnp.float32),
        grid_spec=grid_spec,
        compiler_params=pltpu.CompilerParams(
            dimension_semantics=("parallel", "arbitrary"),
            vmem_limit_bytes=vmem_limit,
        ),
    )(xp, w_in, b_in, w1, b1, w2, b2, w_cls, b_cls)

    return out_padded[:B, :C]


def init_params(key, image_size, hidden_dim, n_layers, n_classes):
    d_in = image_size ** 2
    ks = jax.random.split(key, 8)

    def lin(k, fan_in, shape):
        return jax.random.normal(k, shape, jnp.float32) / jnp.sqrt(fan_in)

    return {
        "w_in": lin(ks[0], d_in, (d_in, hidden_dim)),
        "b_in": jax.random.normal(ks[1], (hidden_dim,), jnp.float32) * 0.01,
        "w1": lin(ks[2], hidden_dim, (max(n_layers, 1), hidden_dim, hidden_dim)),
        "b1": jax.random.normal(ks[3], (max(n_layers, 1), hidden_dim), jnp.float32) * 0.01,
        "w2": lin(ks[4], hidden_dim, (max(n_layers, 1), hidden_dim, hidden_dim)),
        "b2": jax.random.normal(ks[5], (max(n_layers, 1), hidden_dim), jnp.float32) * 0.01,
        "w_cls": lin(ks[6], hidden_dim, (hidden_dim, n_classes)),
        "b_cls": jax.random.normal(ks[7], (n_classes,), jnp.float32) * 0.01,
    }


def reference_forward(x, params, n_layers):
    # pure-JAX f32 reference for sanity checking
    h = x @ params["w_in"] + params["b_in"]
    for l in range(n_layers):
        h1 = jax.nn.gelu(h @ params["w1"][l] + params["b1"][l], approximate=False)
        h = jax.nn.gelu(h1 @ params["w2"][l] + params["b2"][l], approximate=False)
    logits = h @ params["w_cls"] + params["b_cls"]
    return jax.nn.softmax(logits, axis=-1)


if __name__ == "__main__":
    # small shapes consistent with the module
    image_size = 16      # -> input features = 256
    hidden_dim = 32
    n_layers = 2
    n_classes = 10
    batch = 2

    key = jax.random.PRNGKey(0)
    k_x, k_p = jax.random.split(key)

    x = jax.random.normal(k_x, (batch, image_size ** 2), jnp.float32)
    params = init_params(k_p, image_size, hidden_dim, n_layers, n_classes)

    out = mlp_cls_forward(x, params, n_layers)
    out = jax.block_until_ready(out)

    ref = reference_forward(x, params, n_layers)
    assert out.shape == (batch, n_classes)
    # tolerance loosened for bf16 MXU matmuls + approx reciprocal
    assert jnp.allclose(out, ref, atol=2e-2, rtol=2e-2), "mismatch vs JAX reference"
    assert jnp.allclose(jnp.sum(out, axis=-1), 1.0, atol=5e-3)

    print("KERNEL_OK")
</pallas_src>

<mosaic_0001>
module attributes {stable_mosaic.version = 11 : i64} {
  func.func @mlp_cls_kernel(%arg0: i32, %arg1: i32, %arg2: memref<8x256xbf16, #tpu.memory_space<vmem>>, %arg3: memref<256x128xbf16, #tpu.memory_space<vmem>>, %arg4: memref<1x128xf32, #tpu.memory_space<vmem>>, %arg5: memref<1x128x128xbf16, #tpu.memory_space<vmem>>, %arg6: memref<1x1x128xf32, #tpu.memory_space<vmem>>, %arg7: memref<1x128x128xbf16, #tpu.memory_space<vmem>>, %arg8: memref<1x1x128xf32, #tpu.memory_space<vmem>>, %arg9: memref<128x128xbf16, #tpu.memory_space<vmem>>, %arg10: memref<1x128xf32, #tpu.memory_space<vmem>>, %arg11: memref<8x128xf32, #tpu.memory_space<vmem>>, %arg12: memref<8x128xf32, #tpu.memory_space<vmem>>) attributes {dimension_semantics = [#tpu.dimension_semantics<parallel>, #tpu.dimension_semantics<arbitrary>], iteration_bounds = array<i64: 1, 2>, scalar_prefetch = 0 : i64, scratch_operands = 1 : i64, tpu.core_type = #tpu.core_type<tc>, window_params = [{transform_indices = @transform_0, window_bounds = array<i64: 8, 256>}, {pipeline_mode = #tpu.pipeline_mode<synchronous>, transform_indices = @transform_1, window_bounds = array<i64: 256, 128>}, {pipeline_mode = #tpu.pipeline_mode<synchronous>, transform_indices = @transform_2, window_bounds = array<i64: 1, 128>}, {transform_indices = @transform_3, window_bounds = array<i64: 1, 128, 128>}, {transform_indices = @transform_4, window_bounds = array<i64: 1, 1, 128>}, {transform_indices = @transform_5, window_bounds = array<i64: 1, 128, 128>}, {transform_indices = @transform_6, window_bounds = array<i64: 1, 1, 128>}, {pipeline_mode = #tpu.pipeline_mode<synchronous>, transform_indices = @transform_7, window_bounds = array<i64: 128, 128>}, {pipeline_mode = #tpu.pipeline_mode<synchronous>, transform_indices = @transform_8, window_bounds = array<i64: 1, 128>}, {transform_indices = @transform_9, window_bounds = array<i64: 8, 128>}]} {
    %c0_i32 = arith.constant 0 : i32
    %0 = arith.cmpi eq, %arg1, %c0_i32 : i32
    %1 = arith.extui %0 : i1 to i32
    %c0_i32_0 = arith.constant 0 : i32
    %2 = arith.cmpi ne, %1, %c0_i32_0 : i32
    scf.if %2 {
      %c0_24 = arith.constant 0 : index
      %c0_25 = arith.constant 0 : index
      %40 = vector.load %arg2[%c0_24, %c0_25] : memref<8x256xbf16, #tpu.memory_space<vmem>>, vector<8x256xbf16>
      %c0_26 = arith.constant 0 : index
      %c0_27 = arith.constant 0 : index
      %41 = vector.load %arg3[%c0_26, %c0_27] : memref<256x128xbf16, #tpu.memory_space<vmem>>, vector<256x128xbf16>
      %cst_28 = arith.constant dense<0.000000e+00> : vector<8x128xf32>
      %42 = tpu.matmul %40, %41, %cst_28 {dimension_numbers = #tpu.dot_dimension_numbers<[1], [0], [0], [1], [0, 0, 1, 1], [], []>} : vector<8x256xbf16>, vector<256x128xbf16>, vector<8x128xf32> -> vector<8x128xf32>
      %c0_29 = arith.constant 0 : index
      %c0_30 = arith.constant 0 : index
      %43 = vector.load %arg4[%c0_29, %c0_30] : memref<1x128xf32, #tpu.memory_space<vmem>>, vector<1x128xf32>
      %44 = vector.broadcast %43 : vector<1x128xf32> to vector<8x128xf32>
      %45 = arith.addf %42, %44 : vector<8x128xf32>
      %c0_31 = arith.constant 0 : index
      %c0_32 = arith.constant 0 : index
      %46 = vector.load %arg12[%c0_31, %c0_32] : memref<8x128xf32, #tpu.memory_space<vmem>>, vector<8x128xf32>
      tpu.vector_store %arg12[%c0_31, %c0_32], %45 {strides = array<i32>} : memref<8x128xf32, #tpu.memory_space<vmem>>, vector<8x128xf32>,
    } else {
    }
    %c0 = arith.constant 0 : index
    %c0_1 = arith.constant 0 : index
    %3 = vector.load %arg12[%c0, %c0_1] : memref<8x128xf32, #tpu.memory_space<vmem>>, vector<8x128xf32>
    %4 = arith.truncf %3 : vector<8x128xf32> to vector<8x128xbf16>
    %c0_2 = arith.constant 0 : index
    %c0_3 = arith.constant 0 : index
    %c0_4 = arith.constant 0 : index
    %5 = vector.load %arg5[%c0_2, %c0_3, %c0_4] : memref<1x128x128xbf16, #tpu.memory_space<vmem>>, vector<1x128x128xbf16>
    %6 = vector.shape_cast %5 : vector<1x128x128xbf16> to vector<128x128xbf16>
    %cst = arith.constant dense<0.000000e+00> : vector<8x128xf32>
    %7 = tpu.matmul %4, %6, %cst {dimension_numbers = #tpu.dot_dimension_numbers<[1], [0], [0], [1], [0, 0, 1, 1], [], []>} : vector<8x128xbf16>, vector<128x128xbf16>, vector<8x128xf32> -> vector<8x128xf32>
    %c0_5 = arith.constant 0 : index
    %c0_6 = arith.constant 0 : index
    %c0_7 = arith.constant 0 : index
    %8 = vector.load %arg6[%c0_5, %c0_6, %c0_7] : memref<1x1x128xf32, #tpu.memory_space<vmem>>, vector<1x1x128xf32>
    %9 = vector.shape_cast %8 : vector<1x1x128xf32> to vector<1x128xf32>
    %10 = vector.broadcast %9 : vector<1x128xf32> to vector<8x128xf32>
    %11 = arith.addf %7, %10 : vector<8x128xf32>
    %cst_8 = arith.constant 5.000000e-01 : f32
    %12 = vector.broadcast %cst_8 : f32 to vector<8x128xf32>
    %13 = arith.mulf %12, %11 : vector<8x128xf32>
    %cst_9 = arith.constant 0.707106769 : f32
    %14 = vector.broadcast %cst_9 : f32 to vector<8x128xf32>
    %15 = arith.mulf %11, %14 : vector<8x128xf32>
    %16 = math.erf %15 : vector<8x128xf32>
    %cst_10 = arith.constant 1.000000e+00 : f32
    %17 = vector.broadcast %cst_10 : f32 to vector<8x128xf32>
    %18 = arith.addf %17, %16 : vector<8x128xf32>
    %19 = arith.mulf %13, %18 : vector<8x128xf32>
    %20 = arith.truncf %19 : vector<8x128xf32> to vector<8x128xbf16>
    %c0_11 = arith.constant 0 : index
    %c0_12 = arith.constant 0 : index
    %c0_13 = arith.constant 0 : index
    %21 = vector.load %arg7[%c0_11, %c0_12, %c0_13] : memref<1x128x128xbf16, #tpu.memory_space<vmem>>, vector<1x128x128xbf16>
    %22 = vector.shape_cast %21 : vector<1x128x128xbf16> to vector<128x128xbf16>
    %cst_14 = arith.constant dense<0.000000e+00> : vector<8x128xf32>
    %23 = tpu.matmul %20, %22, %cst_14 {dimension_numbers = #tpu.dot_dimension_numbers<[1], [0], [0], [1], [0, 0, 1, 1], [], []>} : vector<8x128xbf16>, vector<128x128xbf16>, vector<8x128xf32> -> vector<8x128xf32>
    %c0_15 = arith.constant 0 : index
    %c0_16 = arith.constant 0 : index
    %c0_17 = arith.constant 0 : index
    %24 = vector.load %arg8[%c0_15, %c0_16, %c0_17] : memref<1x1x128xf32, #tpu.memory_space<vmem>>, vector<1x1x128xf32>
    %25 = vector.shape_cast %24 : vector<1x1x128xf32> to vector<1x128xf32>
    %26 = vector.broadcast %25 : vector<1x128xf32> to vector<8x128xf32>
    %27 = arith.addf %23, %26 : vector<8x128xf32>
    %cst_18 = arith.constant 5.000000e-01 : f32
    %28 = vector.broadcast %cst_18 : f32 to vector<8x128xf32>
    %29 = arith.mulf %28, %27 : vector<8x128xf32>
    %cst_19 = arith.constant 0.707106769 : f32
    %30 = vector.broadcast %cst_19 : f32 to vector<8x128xf32>
    %31 = arith.mulf %27, %30 : vector<8x128xf32>
    %32 = math.erf %31 : vector<8x128xf32>
    %cst_20 = arith.constant 1.000000e+00 : f32
    %33 = vector.broadcast %cst_20 : f32 to vector<8x128xf32>
    %34 = arith.addf %33, %32 : vector<8x128xf32>
    %35 = arith.mulf %29, %34 : vector<8x128xf32>
    %c0_21 = arith.constant 0 : index
    %c0_22 = arith.constant 0 : index
    %36 = vector.load %arg12[%c0_21, %c0_22] : memref<8x128xf32, #tpu.memory_space<vmem>>, vector<8x128xf32>
    tpu.vector_store %arg12[%c0_21, %c0_22], %35 {strides = array<i32>} : memref<8x128xf32, #tpu.memory_space<vmem>>, vector<8x128xf32>,
    %c1_i32 = arith.constant 1 : i32
    %37 = arith.cmpi eq, %arg1, %c1_i32 : i32
    %38 = arith.extui %37 : i1 to i32
    %c0_i32_23 = arith.constant 0 : i32
    %39 = arith.cmpi ne, %38, %c0_i32_23 : i32
    scf.if %39 {
      %c0_24 = arith.constant 0 : index
      %c0_25 = arith.constant 0 : index
      %40 = vector.load %arg12[%c0_24, %c0_25] : memref<8x128xf32, #tpu.memory_space<vmem>>, vector<8x128xf32>
      %41 = arith.truncf %40 : vector<8x128xf32> to vector<8x128xbf16>
      %c0_26 = arith.constant 0 : index
      %c0_27 = arith.constant 0 : index
      %42 = vector.load %arg9[%c0_26, %c0_27] : memref<128x128xbf16, #tpu.memory_space<vmem>>, vector<128x128xbf16>
      %cst_28 = arith.constant dense<0.000000e+00> : vector<8x128xf32>
      %43 = tpu.matmul %41, %42, %cst_28 {dimension_numbers = #tpu.dot_dimension_numbers<[1], [0], [0], [1], [0, 0, 1, 1], [], []>} : vector<8x128xbf16>, vector<128x128xbf16>, vector<8x128xf32> -> vector<8x128xf32>
      %c0_29 = arith.constant 0 : index
      %c0_30 = arith.constant 0 : index
      %44 = vector.load %arg10[%c0_29, %c0_30] : memref<1x128xf32, #tpu.memory_space<vmem>>, vector<1x128xf32>
      %45 = vector.broadcast %44 : vector<1x128xf32> to vector<8x128xf32>
      %46 = arith.addf %43, %45 : vector<8x128xf32>
      %cst_31 = arith.constant dense<0xFF800000> : vector<8xf32>
      %47 = vector.multi_reduction <maximumf>, %46, %cst_31 [1] : vector<8x128xf32> to vector<8xf32>
      %48 = vector.shape_cast %47 : vector<8xf32> to vector<8x1xf32>
      %49 = vector.broadcast %48 : vector<8x1xf32> to vector<8x128xf32>
      %50 = arith.subf %46, %49 : vector<8x128xf32>
      %51 = math.exp %50 : vector<8x128xf32>
      %cst_32 = arith.constant dense<0.000000e+00> : vector<8xf32>
      %52 = vector.multi_reduction <add>, %51, %cst_32 [1] : vector<8x128xf32> to vector<8xf32>
      %53 = vector.shape_cast %52 : vector<8xf32> to vector<8x1xf32>
      %54 = tpu.reciprocal %53 {approx = true} : vector<8x1xf32> -> vector<8x1xf32>
      %55 = vector.broadcast %54 : vector<8x1xf32> to vector<8x128xf32>
      %56 = arith.mulf %51, %55 : vector<8x128xf32>
      %c0_33 = arith.constant 0 : index
      %c0_34 = arith.constant 0 : index
      %57 = vector.load %arg11[%c0_33, %c0_34] : memref<8x128xf32, #tpu.memory_space<vmem>>, vector<8x128xf32>
      tpu.vector_store %arg11[%c0_33, %c0_34], %56 {strides = array<i32>} : memref<8x128xf32, #tpu.memory_space<vmem>>, vector<8x128xf32>,
    } else {
    }
    return
  }
  func.func @transform_0(%arg0: i32, %arg1: i32) -> (i32, i32) {
    %c0_i32 = arith.constant 0 : i32
    %c0_i32_0 = arith.constant 0 : i32
    return %arg0, %c0_i32 : i32, i32
  }
  func.func @transform_1(%arg0: i32, %arg1: i32) -> (i32, i32) {
    %c0_i32 = arith.constant 0 : i32
    %c0_i32_0 = arith.constant 0 : i32
    %c0_i32_1 = arith.constant 0 : i32
    return %c0_i32, %c0_i32_0 : i32, i32
  }
  func.func @transform_2(%arg0: i32, %arg1: i32) -> (i32, i32) {
    %c0_i32 = arith.constant 0 : i32
    %c0_i32_0 = arith.constant 0 : i32
    %c0_i32_1 = arith.constant 0 : i32
    return %c0_i32, %c0_i32_0 : i32, i32
  }
  func.func @transform_3(%arg0: i32, %arg1: i32) -> (i32, i32, i32) {
    %c0_i32 = arith.constant 0 : i32
    %c0_i32_0 = arith.constant 0 : i32
    %c0_i32_1 = arith.constant 0 : i32
    return %arg1, %c0_i32, %c0_i32_0 : i32, i32, i32
  }
  func.func @transform_4(%arg0: i32, %arg1: i32) -> (i32, i32, i32) {
    %c0_i32 = arith.constant 0 : i32
    %c0_i32_0 = arith.constant 0 : i32
    %c0_i32_1 = arith.constant 0 : i32
    return %arg1, %c0_i32, %c0_i32_0 : i32, i32, i32
  }
  func.func @transform_5(%arg0: i32, %arg1: i32) -> (i32, i32, i32) {
    %c0_i32 = arith.constant 0 : i32
    %c0_i32_0 = arith.constant 0 : i32
    %c0_i32_1 = arith.constant 0 : i32
    return %arg1, %c0_i32, %c0_i32_0 : i32, i32, i32
  }
  func.func @transform_6(%arg0: i32, %arg1: i32) -> (i32, i32, i32) {
    %c0_i32 = arith.constant 0 : i32
    %c0_i32_0 = arith.constant 0 : i32
    %c0_i32_1 = arith.constant 0 : i32
    return %arg1, %c0_i32, %c0_i32_0 : i32, i32, i32
  }
  func.func @transform_7(%arg0: i32, %arg1: i32) -> (i32, i32) {
    %c0_i32 = arith.constant 0 : i32
    %c0_i32_0 = arith.constant 0 : i32
    %c0_i32_1 = arith.constant 0 : i32
    return %c0_i32, %c0_i32_0 : i32, i32
  }
  func.func @transform_8(%arg0: i32, %arg1: i32) -> (i32, i32) {
    %c0_i32 = arith.constant 0 : i32
    %c0_i32_0 = arith.constant 0 : i32
    %c0_i32_1 = arith.constant 0 : i32
    return %c0_i32, %c0_i32_0 : i32, i32
  }
  func.func @transform_9(%arg0: i32, %arg1: i32) -> (i32, i32) {
    %c0_i32 = arith.constant 0 : i32
    %c0_i32_0 = arith.constant 0 : i32
    return %arg0, %c0_i32 : i32, i32
  }
}

</mosaic_0001>

<bundles_post_ra>
// kernel: tpu_custom_call.1
= control target key start
LH: loop header
LB: loop body
LE: loop exit
PB: predicated region body
PF: predicated region fallthrough
CT: control target
= control target key end

     0   :  { %s2131_s0 = inlined_call_operand.hbm [shape: bf16[8,256], index: 0, kind: input, shape index: {}]   ;;  %s2132_s1 = inlined_call_operand.hbm [shape: bf16[256,128], index: 1, kind: input, shape index: {}]   ;;  %s2133_s2 = inlined_call_operand.vmem [shape: f32[1,128], index: 2, kind: input, shape index: {}]   ;;  %s2134_s3 = inlined_call_operand.hbm [shape: bf16[2,128,128], index: 3, kind: input, shape index: {}]   ;;  %s2135_s4 = inlined_call_operand.vmem [shape: f32[2,1,128], index: 4, kind: input, shape index: {}]   ;;  %s2136_s5 = inlined_call_operand.hbm [shape: bf16[2,128,128], index: 5, kind: input, shape index: {}]   ;;  %s2137_s6 = inlined_call_operand.vmem [shape: f32[2,1,128], index: 6, kind: input, shape index: {}]   ;;  %s2138_s7 = inlined_call_operand.hbm [shape: bf16[128,128], index: 7, kind: input, shape index: {}]   ;;  %s2139_s8 = inlined_call_operand.vmem [shape: f32[1,128], index: 8, kind: input, shape index: {}]   ;;  %s2140_s9 = inlined_call_operand.hbm [shape: f32[8,128], index: 9, kind: output, shape index: {}]  }
   0x1   :  { %2158 = sst [smem:[#allocation20_spill]] %s2131_s0 }
   0x2   :  { %2159 = sst [smem:[#allocation21_spill]] %s2132_s1 }
   0x3   :  { %2160 = sst [smem:[#allocation22_spill]] %s2133_s2 }
   0x4   :  { %2161 = sst [smem:[#allocation23_spill]] %s2134_s3 }
   0x5   :  { %2162 = sst [smem:[#allocation24_spill]] %s2135_s4 }
   0x6   :  { %2163 = sst [smem:[#allocation25_spill]] %s2137_s6 }
   0x7   :  { %2164 = sst [smem:[#allocation26_spill]] %s2139_s8 }
   0x8   :  { %2165 = sst [smem:[#allocation27_spill]] %s2140_s9 }
   0x9   :  { %14 = vsyncpa [#allocation4], 0 }
   0xa   :  { %15 = vsyncpa [#allocation7], 0 }
   0xb   :  { %16 = vsyncpa [#allocation5], 0  ;;  %s1793_s30 = smov 0   ;;  %s1795_s10 = smov 0  }
   0xc   :  { %s1797_s11 = smov 0   ;;  %s1799_s12 = smov 0  }
   0xd   :  { %s1801_s13 = smov 0   ;;  %s1803_s14 = smov 0  }
   0xe LB: > { %2166 = sst [smem:[#allocation17_spill]] %s1721_s12  ;;  %s1822_s15 = sadd.s32 4294967295, %s1729_s14   ;;  %s1729_s14 = sphi %s1803_s14, %s22_s14   ;;  %s1725_s13 = sphi %s1801_s13, %s2210_s13   ;;  %s1721_s12 = sphi %s1799_s12, %s2209_s12   ;;  %s1717_s11 = sphi %s1797_s11, %s2208_s11   ;;  %s1713_s10 = sphi %s1795_s10, %s2207_s10   ;;  %s1709_s30 = sphi %s1793_s30, %s2206_s30  }
   0xf   : > { %2167 = sst [smem:[#allocation18_spill]] %s1729_s14  ;;  %p116_p0 = scmp.ne.s32.totalorder %s1717_s11, %s1713_s10 }
  0x10   : > { %p117_p1 = scmp.eq.s32.totalorder %s1729_s14, 0  ;;  %p122_p2 = scmp.ne.s32.totalorder %s1713_s10, %s1709_s30 }
  0x11   : > { %p2141_p3 = scmp.eq.s32.totalorder %s1822_s15, 0  ;;  %p1159_p5 = scmp.ge.s32.totalorder %s1729_s14, 1 }
  0x12   : > { %p118_p4 = por %p117_p1, %p116_p0  ;;  %p279_p7 = scmp.lt.s32.totalorder %s1729_s14, 3 }
  0x13   : > { %p1833_p6 = por %p2141_p3, %p122_p2  ;;  %s1731_s19 = smov [#allocation3]  }
  0x14   : > { %p1838_p8 = pnand %p1159_p5, %p279_p7  ;;  %s295_s20 = sshll.u32 %s1731_s19, 4  ;;  %s296_s20 = int_to_ptr.vmem [resolvable:$true] %s295_s20 }
  0x15   : > { %s2168_s17 = scalar_select %p1833_p6, 1, 0 }
  0x16   : > { %s2169_s18 = scalar_select %p1838_p8, 1, 0 }
  0x17   : > { %p1359_p9 = pneg %p1838_p8  ;;  %p1379_p10 = scmp.lt.s32.totalorder %s1729_s14, 2 }
  0x18   : > { %s1732_s23 = smov [#allocation6]   ;;  %s2172_s0 = sld [smem:[#allocation20_spill]] }
  0x19   : > { %p1847_p11 = pnand %p1359_p9, %p2141_p3  ;;  %p1851_p12 = pnand %p1379_p10, %p118_p4 }
  0x1a   : > { %s305_s24 = sshll.u32 %s1732_s23, 4  ;;  %s306_s24 = int_to_ptr.vmem [resolvable:$true] %s305_s24 }
  0x1b   : > { %s2170_s21 = scalar_select %p1847_p11, 1, 0 }
  0x1c   : > { %s2171_s22 = scalar_select %p1851_p12, 1, 0 }
  0x1d   : > { %p1863_p0 = pneg %p1847_p11 }
  0x1e   : > { %s1493_s27 = scalar_lea.hbm %s2172_s0, 128 }
  0x1f   : > { %p1494_p13 = scmp.ne.s32.totalorder %s2172_s0, %s1493_s27  ;;  %p1500_p4 = scmp.lt.u32.totalorder %s1493_s27, %s2172_s0 }
  0x20   : > { %s2173_s30 = scalar_select %p1863_p0, 1, 0 }
  0x21   : > { %p1496_p1 = pnand %p1863_p0, %p1494_p13 }
  0x23   : > { %p1497_p2 = pneg %p1496_p1 }
  0x25   : > { %p1502_p5 = pnand %p1500_p4, %p1497_p2 }
  0x27   : > { %1505 = shalt.err (!%p1502_p5)
}
  0x28   : > { %s1506_s23 = scalar_lea.vmem %s296_s20, 128  ;;  %p1514_p3 = scmp.lt.s32.totalorder %s296_s20, %s296_s20 }
  0x29   : > { %p1507_p7 = scmp.ne.s32.totalorder %s296_s20, %s1506_s23  ;;  %p1515_p6 = scmp.lt.s32.totalorder %s1506_s23, %s1506_s23 }
  0x2b   : > { %p1509_p9 = pnand %p1507_p7, %p1863_p0  ;;  %p1516_p8 = por %p1515_p6, %p1514_p3 }
  0x2d   : > { %p1510_p10 = pneg %p1509_p9 }
  0x2f   : > { %p1517_p12 = pnand %p1516_p8, %p1510_p10 }
  0x31   : > { %1520 = shalt.err (!%p1517_p12)
}
  0x32   : > { %1362 = dma.hbm_to_vmem [thread:$0]  (!%p1847_p11), %s2172_s0, 128, %s296_s20, [#allocation4]  }
  0x33   : > { %s2174_s1 = sld [smem:[#allocation21_spill]] }
  0x39   : > { %s1521_s28 = scalar_lea.hbm %s2174_s1, 2048 }
  0x3a   : > { %p1522_p13 = scmp.ne.s32.totalorder %s2174_s1, %s1521_s28  ;;  %p1528_p8 = scmp.lt.u32.totalorder %s1521_s28, %s2174_s1 }
  0x3c   : > { %p1524_p3 = pnand %p1522_p13, %p1863_p0 }
  0x3e   : > { %p1525_p6 = pneg %p1524_p3 }
  0x40   : > { %p1530_p12 = pnand %p1528_p8, %p1525_p6 }
  0x42   : > { %1533 = shalt.err (!%p1530_p12)
}
  0x43   : > { %s1534_s25 = scalar_lea.vmem %s306_s24, 2048  ;;  %p1542_p5 = scmp.lt.s32.totalorder %s306_s24, %s306_s24 }
  0x44   : > { %p1535_p1 = scmp.ne.s32.totalorder %s306_s24, %s1534_s25  ;;  %p1543_p7 = scmp.lt.s32.totalorder %s1534_s25, %s1534_s25 }
  0x46   : > { %p1537_p2 = pnand %p1535_p1, %p1863_p0  ;;  %p1544_p9 = por %p1543_p7, %p1542_p5 }
  0x48   : > { %p1538_p4 = pneg %p1537_p2 }
  0x4a   : > { %p1545_p10 = pnand %p1544_p9, %p1538_p4 }
  0x4c   : > { %1548 = shalt.err (!%p1545_p10)
}
  0x4d   : > { %s2146_s20 = smov 64   ;;  %s2148_s9 = smov 4  }
  0x4e   : > { %1365 = dma.hbm_to_vmem [thread:$0]  (!%p1847_p11), %s2174_s1, 2048, %s306_s24, [#allocation7], %s2146_s20, %s2146_s20, %s2148_s9  }
  0x4f   : > { %s338_s27 = sand.u32 1, %s1729_s14   ;;  %s31_s28 = sadd.s32 1, %s1725_s13 }
  0x50   : > { %p32_p13 = scmp.ge.s32.totalorder %s31_s28, 2  ;;  %s340_s29 = sand.u32 1, %s1717_s11  }
  0x51   : > { %s1903_s19 = sshll.u32 %s340_s29, 6  ;;  %s2150_s23 = sshll.u32 %s1725_s13, 10 }
  0x52   : > { %s2212_s28 = smov (%p32_p13, %s31_s28), 0  ;;  %s2176_s3 = sld [smem:[#allocation23_spill]] }
  0x53   : > { %2175 = sst [smem:[#allocation19_spill]] %s2212_s28  ;;  %s106_s24 = ssub.s32 %s1725_s13, %s2212_s28 }
  0x54   : > { %s342_s26 = scalar_lea.vmem [#allocation8], %s1903_s19  ;;  %p1918_p3 = scmp.eq.s32.totalorder %s106_s24, 0 }
  0x55   : > { %s349_s16 = sshll.u32 %s342_s26, 4  ;;  %s1924_s20 = scalar_lea.sflag [#allocation4], %s338_s27  ;;  %s1922_s16 = int_to_ptr.vmem [resolvable:$true] %s349_s16 }
  0x56   : > { %p2178_p8 = scmp.ne.s32.totalorder %s2171_s22, 0 }
  0x58   : > { %s1913_s8 = scalar_lea.hbm %s2176_s3, %s2150_s23  ;;  %p2157_p12 = pneg %p2178_p8 }
  0x59   : > { %s1549_s9 = scalar_lea.hbm %s1913_s8, 1024  ;;  %s1554_s26 = scalar_lea.hbm %s2176_s3, 2048 }
  0x5a   : > { %p1550_p6 = scmp.ne.s32.totalorder %s1913_s8, %s1549_s9  ;;  %p1555_p4 = scmp.lt.u32.totalorder %s1913_s8, %s2176_s3 }
  0x5b   : > { %p1556_p5 = scmp.lt.u32.totalorder %s1554_s26, %s1549_s9  ;;  %p1558_p9 = scmp.lt.u32.totalorder %s1549_s9, %s1913_s8 }
  0x5c   : > { %p1552_p1 = pnand %p2157_p12, %p1550_p6 }
  0x5d   : > { %p1557_p7 = por %p1556_p5, %p1555_p4 }
  0x5e   : > { %p1553_p2 = pneg %p1552_p1 }
  0x5f   : > { %p1559_p10 = por %p1558_p9, %p1557_p7 }
  0x61   : > { %p1560_p13 = pnand %p1559_p10, %p1553_p2 }
  0x63   : > { %1563 = shalt.err (!%p1560_p13)
}
  0x64   : > { %s1564_s27 = scalar_lea.vmem %s1922_s16, 1024  ;;  %s1735_s0 = smov [#allocation8]  }
  0x65   : > { %p1565_p6 = scmp.ne.s32.totalorder %s1922_s16, %s1564_s27  ;;  %s1569_s25 = sshll.u32 %s1735_s0, 4  ;;  %s1570_s25 = int_to_ptr.vmem [resolvable:$false] %s1569_s25 }
  0x66   : > { %s1571_s23 = scalar_lea.vmem %s1570_s25, 2048  ;;  %p1572_p0 = scmp.lt.s32.totalorder %s1922_s16, %s1570_s25 }
  0x67   : > { %p1567_p1 = pnand %p1565_p6, %p2157_p12  ;;  %p1573_p4 = scmp.lt.s32.totalorder %s1571_s23, %s1564_s27 }
  0x69   : > { %p1568_p11 = pneg %p1567_p1  ;;  %p1574_p5 = por %p1573_p4, %p1572_p0 }
  0x6b   : > { %p1575_p7 = pnand %p1574_p5, %p1568_p11 }
  0x6d   : > { %1578 = shalt.err (!%p1575_p7)
}
  0x6e   : > { %s2179_s9 = smov 4   ;;  %s2180_s26 = smov 64  }
  0x6f   : > { %1372 = dma.hbm_to_vmem [thread:$0]  (!%p2178_p8), %s1913_s8, 1024, %s1922_s16, %s1924_s20, %s2180_s26, %s2180_s26, %s2179_s9  }
  0x70   : > { %s2181_s24 = sadd.s32 1, %s1717_s11  ;;  %s1736_s0 = smov [#allocation10]  }
  0x71   : > { %s1960_s27 = scalar_select %p1918_p3, %s1717_s11, %s2181_s24  }
  0x72   : > { %s321_s25 = sshll.u32 %s1736_s0, 4  ;;  %s2182_s23 = sshll.u32 %s1725_s13, 10  ;;  %s322_s25 = int_to_ptr.vmem [resolvable:$true] %s321_s25 }
  0x73   : > { %s1967_s28 = scalar_lea.hbm %s2136_s5, %s2182_s23  ;;  %s369_s14 = scalar_lea.vmem [#allocation9], %s1903_s19 }
  0x74   : > { %s376_s2 = sshll.u32 %s369_s14, 4  ;;  %s1579_s12 = scalar_lea.hbm %s2138_s7, 1024  ;;  %s1991_s2 = int_to_ptr.vmem [resolvable:$true] %s376_s2 }
  0x75   : > { %p1580_p11 = scmp.ne.s32.totalorder %s2138_s7, %s1579_s12  ;;  %p2183_p0 = scmp.ne.s32.totalorder %s2173_s30, 0 }
  0x76   : > { %p1586_p9 = scmp.lt.u32.totalorder %s1579_s12, %s2138_s7 }
  0x77   : > { %p1582_p3 = pnand %p1580_p11, %p2183_p0 }
  0x79   : > { %p1583_p2 = pneg %p1582_p3 }
  0x7b   : > { %p1588_p10 = pnand %p1586_p9, %p1583_p2 }
  0x7d   : > { %1591 = shalt.err (!%p1588_p10)
}
  0x7e   : > { %s1592_s1 = scalar_lea.vmem %s322_s25, 1024  ;;  %p1600_p4 = scmp.lt.s32.totalorder %s322_s25, %s322_s25 }
  0x7f   : > { %p1593_p13 = scmp.ne.s32.totalorder %s322_s25, %s1592_s1  ;;  %p1601_p5 = scmp.lt.s32.totalorder %s1592_s1, %s1592_s1 }
  0x81   : > { %p1595_p6 = pnand %p1593_p13, %p2183_p0  ;;  %p1602_p7 = por %p1601_p5, %p1600_p4 }
  0x83   : > { %p1596_p1 = pneg %p1595_p6 }
  0x85   : > { %p1603_p12 = pnand %p1602_p7, %p1596_p1 }
  0x87   : > { %1606 = shalt.err (!%p1603_p12)
}
  0x88   : > { %p2184_p11 = scmp.ne.s32.totalorder %s2170_s21, 0  ;;  %s1607_s6 = scalar_lea.hbm %s1967_s28, 1024 }
  0x89   : > { %p1608_p0 = scmp.ne.s32.totalorder %s1967_s28, %s1607_s6  ;;  %p2185_p12 = pneg %p2178_p8 }
  0x8a   : > { %1368 = dma.hbm_to_vmem [thread:$0]  (!%p2184_p11), %s2138_s7, 1024, %s322_s25, [#allocation7], %s2180_s26, %s2180_s26, %s2179_s9  }
  0x8b   : > { %p1610_p3 = pnand %p1608_p0, %p2185_p12  ;;  %s1612_s21 = scalar_lea.hbm %s2136_s5, 2048 }
  0x8c   : > { %p1613_p9 = scmp.lt.u32.totalorder %s1967_s28, %s2136_s5  ;;  %p1614_p10 = scmp.lt.u32.totalorder %s1612_s21, %s1607_s6 }
  0x8d   : > { %p1611_p2 = pneg %p1610_p3  ;;  %p1616_p6 = scmp.lt.u32.totalorder %s1607_s6, %s1967_s28 }
  0x8e   : > { %p1615_p13 = por %p1614_p10, %p1613_p9 }
  0x90   : > { %p1617_p1 = por %p1616_p6, %p1615_p13 }
  0x92   : > { %p1618_p4 = pnand %p1617_p1, %p1611_p2 }
  0x94   : > { %1621 = shalt.err (!%p1618_p4)
}
  0x95   : > { %s1622_s0 = scalar_lea.vmem %s1991_s2, 1024  ;;  %p2186_p7 = pmov %p2185_p12 }
  0x96   : > { %p1623_p5 = scmp.ne.s32.totalorder %s1991_s2, %s1622_s0  ;;  %s1737_s25 = smov [#allocation9]  }
  0x97   : > { %s1627_s23 = sshll.u32 %s1737_s25, 4  ;;  %s1628_s23 = int_to_ptr.vmem [resolvable:$false] %s1627_s23 }
  0x98   : > { %p1625_p11 = pnand %p1623_p5, %p2186_p7  ;;  %s1629_s8 = scalar_lea.vmem %s1628_s23, 2048 }
  0x99   : > { %p1630_p12 = scmp.lt.s32.totalorder %s1991_s2, %s1628_s23  ;;  %p1631_p3 = scmp.lt.s32.totalorder %s1629_s8, %s1622_s0 }
  0x9a   : > { %p1626_p0 = pneg %p1625_p11 }
  0x9b   : > { %p1632_p9 = por %p1631_p3, %p1630_p12 }
  0x9d   : > { %p1633_p10 = pnand %p1632_p9, %p1626_p0 }
  0x9f   : > { %1636 = shalt.err (!%p1633_p10)
}
  0xa0   : > { %1375 = dma.hbm_to_vmem [thread:$0]  (!%p2178_p8), %s1967_s28, 1024, %s1991_s2, %s1924_s20, %s2180_s26, %s2180_s26, %s2179_s9  }
  0xa1   : > { %p2187_p2 = scmp.ne.s32.totalorder %s2169_s18, 0 }
  0xa2   : > { %p2188_p13 = scmp.eq.s32.totalorder (!%p2187_p2), %s1822_s15, 0 }
  0xa3   : > { %394 = sbr.rel (%p2187_p2) target bundleno = 1507 (0x5e3), region = 56 }
  0xaa   : > { %1688 = dma.done.wait (%p2188_p13), [#allocation4], 128   ;;  %p2189_p6 = pmov %p2188_p13 }
  0xac   : > { %1690 = vsyncadd (%p2189_p6), [#allocation4], 4294967168  ;;  %p2190_p1 = pmov %p2189_p6 }
  0xae   : > { %1692 = dma.done.wait (%p2190_p1), [#allocation7], 2048   ;;  %p2191_p4 = pmov %p2190_p1 }
  0xaf   : > { %s404_s22 = sand.u32 1, %s1822_s15   ;;  %s406_s2 = sand.u32 1, %s1713_s10  }
  0xb0   : > { %1694 = vsyncadd (%p2191_p4), [#allocation7], 4294965248  ;;  %s1173_s20 = sshll.u32 %s406_s2, 6  ;;  %s405_s18 = scalar_lea.sflag [#allocation4], %s404_s22 }
  0xb1   : > { %s2032_s28 = scalar_lea.vmem [#allocation8], %s1173_s20  ;;  %p2192_p8 = scmp.ne.s32.totalorder %s2168_s17, 0 }
  0xb3   : > { %1696 = dma.done.wait (%p2192_p8), %s405_s18, 2048  }
  0xb4   : > { %1698 = vsyncadd (%p2192_p8), %s405_s18, 4294965248  ;;  %s2038_s9 = scalar_lea.vmem [#allocation9], %s1173_s20  ;;  %p2193_p5 = pmov %p2190_p1 }
  0xb5   : > { %p2194_p7 = pmov %p2190_p1 }
  0xb6   : > { %1700 = dma.done.wait (%p2193_p5), [#allocation7], 1024  }
  0xb7   : > { %1702 = vsyncadd (%p2194_p7), [#allocation7], 4294966272  ;;  %s2195_s26 = sld [smem:[#allocation17_spill]]  ;;  %s2196_s1 = sld [smem:[#allocation24_spill]] }
  0xb8   : > { %s2197_s6 = sld [smem:[#allocation25_spill]] }
  0xbd   : > { %p462_p11 = scmp.lt.s32.totalorder %s2195_s26, 1  ;;  %p1176_p0 = scmp.ne.s32.totalorder %s2195_s26, 0 }
  0xbe   : > { %v1443_v0 = vld [vmem:[#allocation6 + $0x40] sm:$0xff] (!%p1176_p0)   ;;  %v1445_v2 = vld [vmem:[#allocation6 + $0x48] sm:$0xff] (!%p1176_p0)   ;;  %v1447_v4 = vld [vmem:[#allocation6 + $0x50] sm:$0xff] (!%p1176_p0)   ;;  %s2198_s30 = sld [smem:[#allocation22_spill]] (!%p1176_p0) }
  0xbf   : > { %s2046_s16 = scalar_select %p462_p11, %s2195_s26, 1 }
  0xc0   : > { %472 = sbr.rel (%p1176_p0) target bundleno = 442 (0x1ba), region = 80  ;;  %v1444_v1 = vld [vmem:[#allocation6] sm:$0xff] (!%p1176_p0)   ;;  %1230 = vmatprep.subr.bf16.mxu0 (!%p1176_p0), %v1443_v0  ;;  %v1446_v3 = vld [vmem:[#allocation6 + $0x8] sm:$0xff] (!%p1176_p0)   ;;  %v1448_v5 = vld [vmem:[#allocation6 + $0x10] sm:$0xff] (!%p1176_p0)  }
  0xc1   : > { %s464_s17 = scalar_lea.vmem %s2196_s1, %s2046_s16  ;;  %s467_s12 = scalar_lea.vmem %s2197_s6, %s2046_s16  ;;  %1231 = vmatpush3.bf16.msra.mxu0 (!%p1176_p0), %v1444_v1  ;;  %v1449_v6 = vld [vmem:[#allocation6 + $0x58] sm:$0xff] (!%p1176_p0)   ;;  %v1451_v8 = vld [vmem:[#allocation6 + $0x60] sm:$0xff] (!%p1176_p0)   ;;  %v1453_v10 = vld [vmem:[#allocation6 + $0x68] sm:$0xff] (!%p1176_p0)  }
  0xc2   : > { %1232 = vmatprep.subr.bf16.mxu0 (!%p1176_p0), %v1445_v2  ;;  %v1450_v7 = vld [vmem:[#allocation6 + $0x18] sm:$0xff] (!%p1176_p0)   ;;  %v1452_v9 = vld [vmem:[#allocation6 + $0x20] sm:$0xff] (!%p1176_p0)   ;;  %v1454_v13 = vld [vmem:[#allocation6 + $0x28] sm:$0xff] (!%p1176_p0)  }
  0xc3   : > { %v473_v11 = vld [vmem:[#allocation3] sm:$0xff] (!%p1176_p0)  ;;  %v1455_v14 = vld [vmem:[#allocation6 + $0x70] sm:$0xff] (!%p1176_p0)  }
  0xc4   : > { %v1179_v12 = vcombine.high (!%p1176_p0), %v473_v11, %v473_v11  ;;  %v1456_v15 = vld [vmem:[#allocation6 + $0x30] sm:$0xff] (!%p1176_p0)   ;;  %v1457_v16 = vld [vmem:[#allocation6 + $0x78] sm:$0xff] (!%p1176_p0)   ;;  %v1178_v18 = vcombine.low (!%p1176_p0), %v473_v11, %v473_v11 }
  0xc5   : > { %1233 = vmatpush3.bf16.msra.mxu0 (!%p1176_p0), %v1446_v3  ;;  %v1458_v17 = vld [vmem:[#allocation6 + $0x38] sm:$0xff] (!%p1176_p0)   ;;  %v1177_v20 = vld [vmem:[%s2198_s30] ss:$0 sm:$0xff] (!%p1176_p0) }
  0xc6   : > { %1234 = vmatprep.subr.bf16.mxu0 (!%p1176_p0), %v1447_v4  ;;  %648 = vmatprep.mubr.bf16.mxu0 (!%p1176_p0), %v1179_v12 }
  0xc9   : > { %1235 = vmatpush3.bf16.msra.mxu0 %v1448_v5 }
  0xca   : > { %1236 = vmatprep.subr.bf16.mxu0 %v1449_v6 }
  0xcd   : > { %1237 = vmatpush3.bf16.msra.mxu0 %v1450_v7 }
  0xce   : > { %1238 = vmatprep.subr.bf16.mxu0 %v1451_v8 }
  0xd1   : > { %1239 = vmatpush3.bf16.msra.mxu0 %v1452_v9 }
  0xd2   : > { %1240 = vmatprep.subr.bf16.mxu0 %v1453_v10 }
  0xd5   : > { %1241 = vmatpush3.bf16.msra.mxu0 %v1454_v13 }
  0xd6   : > { %1242 = vmatprep.subr.bf16.mxu0 %v1455_v14 }
  0xd9   : > { %1243 = vmatpush3.bf16.msra.mxu0 %v1456_v15 }
  0xda   : > { %1244 = vmatprep.subr.bf16.mxu0 %v1457_v16 }
  0xdd   : > { %1245 = vmatpush3.bf16.msra.mxu0 %v1458_v17 }
  0xe0   : > { %649 = vmatmul.mubr.bf16.vlgmr.msra.gmra.mrb[0].mxu0 %v1178_v18 }
 0x1b3   : > { %v1246_v19 = vpop.f32.mrb[0].mxu0 }
 0x1b4   : > { %v1247_v21 = vpop.f32.mrb[1].mxu0 }
 0x1b5   : > { %v1248_v22 = vadd.f32 %v1247_v21, %v1246_v19  ;;  %v1249_v23 = vpop.f32.mrb[2].mxu0 }
 0x1b6   : > { %v1250_v24 = vpop.f32.mrb[3].mxu0 }
 0x1b7   : > { %v651_v25 = vadd.f32 %v1248_v22, %v1177_v20 }
 0x1b9   : > { %656 = vst [vmem:[#allocation2] sm:$0xff] %v651_v25 }
 0x1ba PF: > { %v1461_v26 = vld [vmem:[%s2032_s28] sm:$0xff]   ;;  %v1738_v27 = vmov 0.0   ;;  %v1462_v28 = vld [vmem:[%s2032_s28 + $0x8] sm:$0xff]   ;;  %vm1739_vm0 = vmmov 0   ;;  %v1463_v29 = vld [vmem:[%s2032_s28 + $0x10] sm:$0xff]   ;;  %s2201_s2 = sld [smem:[#allocation17_spill]] }
 0x1bb   : > { %1279 = vmatprep.subr.bf16.mxu0 %v1738_v27  ;;  %1299 = vmatprep.subr.bf16.mxu1 %v1738_v27  ;;  %v1469_v30 = vld [vmem:[%s2038_s9] sm:$0xff]   ;;  %v1464_v31 = vld [vmem:[%s2032_s28 + $0x18] sm:$0xff]   ;;  %v1470_v32 = vld [vmem:[%s2038_s9 + $0x8] sm:$0xff]  }
 0x1bc   : > { %1280 = vmatpush3.bf16.msra.mxu0 %v1461_v26  ;;  %1295 = vmatprep.mubr.msk.bf16.mxu0 %vm1739_vm0, %v1738_v27  ;;  %v1465_v33 = vld [vmem:[%s2032_s28 + $0x20] sm:$0xff]   ;;  %v1471_v34 = vld [vmem:[%s2038_s9 + $0x10] sm:$0xff]   ;;  %v1466_v35 = vld [vmem:[%s2032_s28 + $0x28] sm:$0xff]  }
 0x1bd   : > { %1281 = vmatprep.subr.bf16.mxu0 %v1738_v27  ;;  %1315 = vmatprep.mubr.msk.bf16.mxu1 %vm1739_vm0, %v1738_v27  ;;  %v1467_v36 = vld [vmem:[%s2032_s28 + $0x30] sm:$0xff]   ;;  %v1468_v37 = vld [vmem:[%s2032_s28 + $0x38] sm:$0xff]   ;;  %v1473_v41 = vld [vmem:[%s2038_s9 + $0x20] sm:$0xff]  }
 0x1be   : > { %1300 = vmatpush3.bf16.msra.mxu1 %v1469_v30  ;;  %v1472_v40 = vld [vmem:[%s2038_s9 + $0x18] sm:$0xff]   ;;  %v1474_v42 = vld [vmem:[%s2038_s9 + $0x28] sm:$0xff]   ;;  %v1475_v43 = vld [vmem:[%s2038_s9 + $0x30] sm:$0xff]  }
 0x1bf   : > { %1301 = vmatprep.subr.bf16.mxu1 %v1738_v27  ;;  %v1476_v44 = vld [vmem:[%s2038_s9 + $0x38] sm:$0xff]   ;;  %v1196_v45 = vld [vmem:[%s464_s17] ss:$0 sm:$0xff] }
 0x1c0   : > { %1282 = vmatpush3.bf16.msra.mxu0 %v1462_v28  ;;  %v657_v38 = vld [vmem:[#allocation2] sm:$0xff]  ;;  %p1214_p12 = scmp.ne.s32.totalorder %s2201_s2, 1 }
 0x1c1   : > { %1283 = vmatprep.subr.bf16.mxu0 %v1738_v27  ;;  %v658_v39 = vpack.c.bf16 %v657_v38, %v657_v38  ;;  %v1205_v57 = vld [vmem:[%s467_s12] ss:$0 sm:$0xff]  ;;  %v1481_v4 = vld [vmem:[#allocation10] sm:$0xff] (!%p1214_p12)   ;;  %v1740_v5 = vmov (!%p1214_p12), 0.0   ;;  %v1482_v6 = vld [vmem:[#allocation10 + $0x8] sm:$0xff] (!%p1214_p12)   ;;  %vm1741_vm1 = vmmov (!%p1214_p12), 0  }
 0x1c2   : > { %1302 = vmatpush3.bf16.msra.mxu1 %v1470_v32  ;;  %v1483_v7 = vld [vmem:[#allocation10 + $0x10] sm:$0xff] (!%p1214_p12)   ;;  %v1484_v8 = vld [vmem:[#allocation10 + $0x18] sm:$0xff] (!%p1214_p12)   ;;  %v1485_v9 = vld [vmem:[#allocation10 + $0x20] sm:$0xff] (!%p1214_p12)   ;;  %s2202_s28 = sld [smem:[#allocation26_spill]] (!%p1214_p12) }
 0x1c3   : > { %1303 = vmatprep.subr.bf16.mxu1 %v1738_v27  ;;  %v1486_v10 = vld [vmem:[#allocation10 + $0x28] sm:$0xff] (!%p1214_p12)   ;;  %v1487_v11 = vld [vmem:[#allocation10 + $0x30] sm:$0xff] (!%p1214_p12)   ;;  %v1488_v12 = vld [vmem:[#allocation10 + $0x38] sm:$0xff] (!%p1214_p12)  }
 0x1c4   : > { %1284 = vmatpush3.bf16.msra.mxu0 %v1463_v29 }
 0x1c5   : > { %1285 = vmatprep.subr.bf16.mxu0 %v1738_v27 }
 0x1c6   : > { %1304 = vmatpush3.bf16.msra.mxu1 %v1471_v34 }
 0x1c7   : > { %1305 = vmatprep.subr.bf16.mxu1 %v1738_v27 }
 0x1c8   : > { %1286 = vmatpush3.bf16.msra.mxu0 %v1464_v31  ;;  %v1215_v15 = vld [vmem:[%s2202_s28] ss:$0 sm:$0xff] (!%p1214_p12) }
 0x1c9   : > { %1287 = vmatprep.subr.bf16.mxu0 %v1738_v27 }
 0x1ca   : > { %1306 = vmatpush3.bf16.msra.mxu1 %v1472_v40 }
 0x1cb   : > { %1307 = vmatprep.subr.bf16.mxu1 %v1738_v27 }
 0x1cc   : > { %1288 = vmatpush3.bf16.msra.mxu0 %v1465_v33 }
 0x1cd   : > { %1289 = vmatprep.subr.bf16.mxu0 %v1738_v27 }
 0x1ce   : > { %1308 = vmatpush3.bf16.msra.mxu1 %v1473_v41 }
 0x1cf   : > { %1309 = vmatprep.subr.bf16.mxu1 %v1738_v27 }
 0x1d0   : > { %1290 = vmatpush3.bf16.msra.mxu0 %v1466_v35 }
 0x1d1   : > { %1291 = vmatprep.subr.bf16.mxu0 %v1738_v27 }
 0x1d2   : > { %1310 = vmatpush3.bf16.msra.mxu1 %v1474_v42 }
 0x1d3   : > { %1311 = vmatprep.subr.bf16.mxu1 %v1738_v27 }
 0x1d4   : > { %1292 = vmatpush3.bf16.msra.mxu0 %v1467_v36 }
 0x1d5   : > { %1293 = vmatprep.subr.bf16.mxu0 %v1738_v27 }
 0x1d6   : > { %1312 = vmatpush3.bf16.msra.mxu1 %v1475_v43 }
 0x1d7   : > { %1313 = vmatprep.subr.bf16.mxu1 %v1738_v27 }
 0x1d8   : > { %1294 = vmatpush3.bf16.msra.mxu0 %v1468_v37 }
 0x1d9   : > { %1319 = vmatprep.subr.bf16.mxu0 (!%p1214_p12), %v1740_v5 }
 0x1da   : > { %1314 = vmatpush3.bf16.msra.mxu1 %v1476_v44 }
 0x1db   : > { %1296 = vmatmul.mubr.bf16.vlgmr.msra.gmra.mrb[0].mxu0 %v658_v39 }
 0x1dc   : > { %1320 = vmatpush3.bf16.msra.mxu0 (!%p1214_p12), %v1481_v4  ;;  %1335 = vmatprep.mubr.msk.bf16.mxu0 (!%p1214_p12), %vm1741_vm1, %v1740_v5 }
 0x1dd   : > { %1321 = vmatprep.subr.bf16.mxu0 (!%p1214_p12), %v1740_v5 }
 0x1e0   : > { %1322 = vmatpush3.bf16.msra.mxu0 (!%p1214_p12), %v1482_v6 }
 0x1e1   : > { %1323 = vmatprep.subr.bf16.mxu0 (!%p1214_p12), %v1740_v5 }
 0x1e4   : > { %1324 = vmatpush3.bf16.msra.mxu0 (!%p1214_p12), %v1483_v7 }
 0x1e5   : > { %1325 = vmatprep.subr.bf16.mxu0 (!%p1214_p12), %v1740_v5 }
 0x1e8   : > { %1326 = vmatpush3.bf16.msra.mxu0 (!%p1214_p12), %v1484_v8 }
 0x1e9   : > { %1327 = vmatprep.subr.bf16.mxu0 (!%p1214_p12), %v1740_v5 }
 0x1ec   : > { %1328 = vmatpush3.bf16.msra.mxu0 (!%p1214_p12), %v1485_v9 }
 0x1ed   : > { %1329 = vmatprep.subr.bf16.mxu0 (!%p1214_p12), %v1740_v5 }
 0x1f0   : > { %1330 = vmatpush3.bf16.msra.mxu0 (!%p1214_p12), %v1486_v10 }
 0x1f1   : > { %1331 = vmatprep.subr.bf16.mxu0 (!%p1214_p12), %v1740_v5 }
 0x1f4   : > { %1332 = vmatpush3.bf16.msra.mxu0 (!%p1214_p12), %v1487_v11 }
 0x1f5   : > { %1333 = vmatprep.subr.bf16.mxu0 (!%p1214_p12), %v1740_v5 }
 0x1f8   : > { %1334 = vmatpush3.bf16.msra.mxu0 (!%p1214_p12), %v1488_v12 }
 0x2ae   : > { %v764_v46 = vpop.f32.mrb[0].mxu0 }
 0x2af   : > { %v765_v47 = vadd.f32 %v1196_v45, %v764_v46  ;;  %v1297_v48 = vpop.f32.mrb[1].mxu0 }
 0x2b0   : > { %v767_v49 = vpop.f32.mrb[2].mxu0 }
 0x2b1   : > { %v771_v50 = vmul.f32 0.70710677, %v765_v47  ;;  %v1298_v51 = vpop.f32.mrb[3].mxu0  ;;  %v770_v53 = vmul.f32 0.5, %v765_v47 }
 0x2b3   : > { %1477 = verf.f32 %v771_v50 }
 0x2bd   : > { %v1478_v52 = vpop.eup %1477 }
 0x2be   : > { %v773_v54 = vadd.f32 1.0, %v1478_v52 }
 0x2c0   : > { %v774_v55 = vmul.f32 %v773_v54, %v770_v53 }
 0x2c2   : > { %v775_v56 = vpack.c.bf16 %v774_v55, %v774_v55 }
 0x2c4   : > { %1316 = vmatmul.mubr.bf16.vlgmr.msra.gmra.mrb[0].mxu1 %v775_v56 }
 0x397   : > { %v881_v58 = vpop.f32.mrb[0].mxu1 }
 0x398   : > { %v882_v59 = vadd.f32 %v1205_v57, %v881_v58  ;;  %v1317_v60 = vpop.f32.mrb[1].mxu1 }
 0x399   : > { %v884_v61 = vpop.f32.mrb[2].mxu1 }
 0x39a   : > { %v888_v62 = vmul.f32 0.70710677, %v882_v59  ;;  %v1318_v63 = vpop.f32.mrb[3].mxu1  ;;  %v887_v1 = vmul.f32 0.5, %v882_v59 }
 0x39c   : > { %1479 = verf.f32 %v888_v62 }
 0x3a5   : > { %896 = sbr.rel (%p1214_p12) target bundleno = 1476 (0x5c4), region = 84 }
 0x3a6   : > { %v1480_v0 = vpop.eup %1479 }
 0x3a7   : > { %v890_v2 = vadd.f32 1.0, %v1480_v0 }
 0x3a9   : > { %v891_v3 = vmul.f32 %v890_v2, %v887_v1 }
 0x3ab   : > { %892 = vst [vmem:[#allocation2] sm:$0xff] %v891_v3 }
 0x3b2   : > { %v897_v13 = vld [vmem:[#allocation2] sm:$0xff] }
 0x3b3   : > { %v898_v14 = vpack.c.bf16 %v897_v13, %v897_v13 }
 0x3b5   : > { %1336 = vmatmul.mubr.bf16.vlgmr.msra.gmra.mrb[0].mxu0 %v898_v14 }
 0x488   : > { %v1004_v16 = vpop.f32.mrb[0].mxu0 }
 0x489   : > { %v1005_v17 = vadd.f32 %v1215_v15, %v1004_v16  ;;  %v1337_v18 = vpop.f32.mrb[1].mxu0 }
 0x48a   : > { %v1007_v19 = vpop.f32.mrb[2].mxu0 }
 0x48b   : > { %1010 = vmax.xlane.f32.xlu0 %v1005_v17  ;;  %v1338_v20 = vpop.f32.mrb[3].mxu0 }
 0x518   : > { %v1011_v21 = vpop.xlane.xlu0 %1010 }
 0x519   : > { %v1012_v22 = vsub.f32 %v1005_v17, %v1011_v21 }
 0x51b   : > { %v1013_v23 = vmul.f32 1.442695, %v1012_v22 }
 0x51d   : > { %1489 = vpow2.f32 %v1013_v23 }
 0x527   : > { %v1490_v24 = vpop.eup %1489 }
 0x528   : > { %1015 = vadd.xlane.f32.xlu0 %v1490_v24 }
 0x5b5   : > { %v1016_v25 = vpop.xlane.xlu0 %1015 }
 0x5b6   : > { %1491 = vrcp.f32 %v1016_v25 }
 0x5c0   : > { %v1492_v26 = vpop.eup %1491 }
 0x5c1   : > { %v1018_v27 = vmul.f32 %v1492_v26, %v1490_v24 }
 0x5c3   : > { %1019 = vst [vmem:[#allocation11] sm:$0xff] %v1018_v27 }
 0x5c4 PF: > { %p1383_p3 = scmp.eq.s32.totalorder %s1822_s15, 1  ;;  %s1742_s9 = smov [#allocation11]  }
 0x5c5   : > { %s1029_s26 = sshll.u32 %s1742_s9, 4  ;;  %s1030_s26 = int_to_ptr.vmem [resolvable:$true] %s1029_s26 }
 0x5c6   : > { %s1637_s16 = scalar_lea.vmem %s1030_s26, 128  ;;  %p1644_p13 = scmp.lt.s32.totalorder %s1030_s26, %s1030_s26 }
 0x5c7   : > { %p1638_p9 = scmp.ne.s32.totalorder %s1030_s26, %s1637_s16  ;;  %p1645_p6 = scmp.lt.s32.totalorder %s1637_s16, %s1637_s16 }
 0x5c9   : > { %p1639_p10 = pnand %p1638_p9, %p1383_p3  ;;  %p1646_p1 = por %p1645_p6, %p1644_p13 }
 0x5cb   : > { %p1640_p2 = pneg %p1639_p10 }
 0x5cd   : > { %p1647_p4 = pnand %p1646_p1, %p1640_p2 }
 0x5cf   : > { %1650 = shalt.err (!%p1647_p4)
}
 0x5d0   : > { %s2203_s1 = sld [smem:[#allocation27_spill]] }
 0x5d6   : > { %s1651_s17 = scalar_lea.hbm %s2203_s1, 128 }
 0x5d7   : > { %p1652_p8 = scmp.ne.s32.totalorder %s2203_s1, %s1651_s17  ;;  %p1657_p11 = scmp.lt.u32.totalorder %s1651_s17, %s2203_s1 }
 0x5d9   : > { %p1653_p5 = pnand %p1652_p8, %p1383_p3 }
 0x5db   : > { %p1654_p7 = pneg %p1653_p5 }
 0x5dd   : > { %p1659_p0 = pnand %p1657_p11, %p1654_p7 }
 0x5df   : > { %1662 = shalt.err (!%p1659_p0)
}
 0x5e0   : > { %1356 = dma.vmem_to_hbm [thread:$0]  (%p1383_p3), %s1030_s26, 128, %s2203_s1, [#allocation5]  }
 0x5e1   : > { %1704 = dma.done.wait (%p1383_p3), [#allocation5], 128  }
 0x5e2   : > { %1706 = vsyncadd (%p1383_p3), [#allocation5], 4294967168 }
 0x5e3 PF: > { %s2204_s30 = sld [smem:[#allocation18_spill]]  ;;  %s2205_s19 = sld [smem:[#allocation19_spill]] }
 0x5e4   : > { %s2209_s12 = smov %s1725_s13 }
 0x5e9   : > { %s22_s14 = sadd.s32 1, %s2204_s30   ;;  %s2206_s30 = smov %s1713_s10 }
 0x5ea   : > { %p19_p12 = scmp.ge.s32.totalorder %s22_s14, 4   ;;  %s2207_s10 = smov %s1717_s11 }
 0x5eb   : > { %s2208_s11 = smov %s1960_s27  ;;  %s2210_s13 = smov %s2205_s19 }
 0x5ec   :  { %21 = sbr.rel (!%p19_p12) target bundleno = 14 (0xe), region = 131 }
 0x5f3   :  { %1042 = vsyncpa [#allocation4], 1 }
 0x5f4   :  { %1044 = vsyncpa [#allocation4 + $0x1], 1 }
 0x5f5   :  { %1045 = vsyncpa [#allocation7], 1 }
 0x5f6   :  { %1046 = vsyncpa [#allocation5], 1 }
 0x5f7   :  { %1048 = vsyncpa [#allocation5 + $0x1], 1 }

</bundles_post_ra>
